<compile_context>
chip_gen: v7x
topology: tpu7x:2x2x1
jax: 0.10.0
libtpu: 0.0.40
codegen_flags: <defaults>
</compile_context>

<pallas_src>
import jax
import jax.numpy as jnp
from jax.experimental import pallas as pl
from jax.experimental.pallas import tpu as pltpu

LANE = 128
D_IN = 28 * 28
D_H1, D_H2, D_OUT = 64, 32, 10


def mlp_kernel(x_ref, w1_ref, b1_ref, w2_ref, b2_ref, w3_ref, b3_ref, o_ref):
    # One batch tile: three MXU matmuls (bf16 operands, f32 accumulation) plus
    # bias/ReLU on the VPU. x is cast to bf16 here, not in the wrapper, so the
    # only HBM read of x is the one the kernel's own input DMA performs.
    x = x_ref[...].astype(jnp.bfloat16)                                   # (tile, 784)
    h1 = jnp.dot(x, w1_ref[...], preferred_element_type=jnp.float32) + b1_ref[...]
    h1 = jnp.maximum(h1, 0.0).astype(jnp.bfloat16)                        # (tile, 128)
    h2 = jnp.dot(h1, w2_ref[...], preferred_element_type=jnp.float32) + b2_ref[...]
    h2 = jnp.maximum(h2, 0.0).astype(jnp.bfloat16)                        # (tile, 128)
    out = jnp.dot(h2, w3_ref[...], preferred_element_type=jnp.float32) + b3_ref[...]
    o_ref[...] = out.astype(o_ref.dtype)                                  # (tile, 10)


def _round_up(v, m):
    return ((v + m - 1) // m) * m


def _select_tile(n, batch_tile):
    """Sublane-aligned (x8) batch tile.

    For larger batches prefer >= 4 grid steps (>= 2 per TensorCore on v7x) so
    each core always has a next x tile to prefetch, and nudge toward an even
    grid so the two cores get balanced work. Single-core chips are unaffected.
    """
    n8 = _round_up(max(int(n), 1), 8)
    tile = min(_round_up(int(batch_tile), 8), n8)
    if n8 >= 32:
        tile = min(tile, max(8, (n8 // 4) // 8 * 8))      # at least 4 grid steps
        steps = pl.cdiv(n8, tile)
        if steps % 2 == 1 and tile > 8:                   # try to make grid even
            cand = max(8, (n8 // (steps + 1)) // 8 * 8)
            if cand >= 8 and pl.cdiv(n8, cand) % 2 == 0:
                tile = cand
    return tile


def _pad2d(a, rows, cols, dtype):
    r, c = a.shape
    return jnp.pad(a, ((0, rows - r), (0, cols - c))).astype(dtype)


def prepare_params(params):
    """One-time parameter packing: lane-pad hidden dims to 128 and cast weights
    to bf16. Zero padding is exact: padded weight rows/cols and bias entries
    are 0, so padded activation lanes stay 0 through ReLU and contribute
    nothing downstream. Call once and reuse across forward calls."""
    return dict(
        w1=_pad2d(params["w1"], D_IN, LANE, jnp.bfloat16),   # (784, 128)
        w2=_pad2d(params["w2"], LANE, LANE, jnp.bfloat16),   # (128, 128)
        w3=_pad2d(params["w3"], LANE, D_OUT, jnp.bfloat16),  # (128, 10)
        b1=_pad2d(params["b1"], 1, LANE, jnp.float32),       # biases stay f32
        b2=_pad2d(params["b2"], 1, LANE, jnp.float32),
        b3=_pad2d(params["b3"], 1, D_OUT, jnp.float32),
    )


def fully_connected_nn(x, prepared, *, batch_tile=1024):
    """x: (N, 784) float32 or bfloat16 (streamed as-is, cast in-kernel).
    prepared: output of prepare_params(). Returns (N, 10) float32 logits."""
    n, d_in = x.shape
    assert d_in == D_IN
    tile = _select_tile(n, batch_tile)
    num_tiles = pl.cdiv(n, tile)

    # x is the only streamed operand: triple-buffer it when the grid is long
    # enough so its DMA never stalls compute. Weights/biases use a constant
    # index_map -> fetched once and kept resident in VMEM across all steps.
    x_kwargs = {"pipeline_mode": pl.Buffered(3)} if num_tiles >= 3 else {}
    x_spec = pl.BlockSpec((tile, D_IN), lambda i: (i, 0), **x_kwargs)
    const = lambda a: pl.BlockSpec(a.shape, lambda i: (0, 0))

    w1, w2, w3 = prepared["w1"], prepared["w2"], prepared["w3"]
    b1, b2, b3 = prepared["b1"], prepared["b2"], prepared["b3"]

    return pl.pallas_call(
        mlp_kernel,
        out_shape=jax.ShapeDtypeStruct((n, D_OUT), jnp.float32),
        grid_spec=pltpu.PrefetchScalarGridSpec(
            num_scalar_prefetch=0,
            grid=(num_tiles,),
            in_specs=[
                x_spec,
                const(w1), const(b1),
                const(w2), const(b2),
                const(w3), const(b3),
            ],
            out_specs=pl.BlockSpec((tile, D_OUT), lambda i: (i, 0)),
        ),
        compiler_params=pltpu.CompilerParams(
            dimension_semantics=("parallel",),
            # Headroom above v5e's 16 MiB scoped default for tile=1024..2048
            # (f32 x tile, 3 buffers); well inside v7x's 64 MiB physical VMEM.
            vmem_limit_bytes=32 * 1024 * 1024,
        ),
    )(x, w1, b1, w2, b2, w3, b3)


def init_params(key):
    """Deterministic init matching the PyTorch layer shapes.
    Weights stored transposed vs. nn.Linear: (in_features, out_features)."""
    ks = jax.random.split(key, 6)

    def uniform_init(kw, kb, fan_in, fan_out):
        # Mimic nn.Linear default init: U(-1/sqrt(fan_in), 1/sqrt(fan_in))
        bound = 1.0 / jnp.sqrt(fan_in)
        w = jax.random.uniform(kw, (fan_in, fan_out), jnp.float32, -bound, bound)
        b = jax.random.uniform(kb, (1, fan_out), jnp.float32, -bound, bound)
        return w, b

    w1, b1 = uniform_init(ks[0], ks[1], D_IN, D_H1)
    w2, b2 = uniform_init(ks[2], ks[3], D_H1, D_H2)
    w3, b3 = uniform_init(ks[4], ks[5], D_H2, D_OUT)
    return {"w1": w1, "b1": b1, "w2": w2, "b2": b2, "w3": w3, "b3": b3}


def reference_forward(x, p):
    h1 = jnp.maximum(x @ p["w1"] + p["b1"], 0.0)
    h2 = jnp.maximum(h1 @ p["w2"] + p["b2"], 0.0)
    return h2 @ p["w3"] + p["b3"]


def reference_forward_bf16(x, p):
    # Same numerical path as the kernel: bf16 operands, f32 accumulation.
    def dot(a, b):
        return jnp.dot(a.astype(jnp.bfloat16), b.astype(jnp.bfloat16),
                       preferred_element_type=jnp.float32)
    h1 = jnp.maximum(dot(x, p["w1"]) + p["b1"], 0.0)
    h2 = jnp.maximum(dot(h1, p["w2"]) + p["b2"], 0.0)
    return dot(h2, p["w3"]) + p["b3"]


if __name__ == "__main__":
    key = jax.random.PRNGKey(0)
    k_params, k_x1, k_x2, k_x3 = jax.random.split(key, 4)
    params = init_params(k_params)
    prepared = prepare_params(params)            # one-time pad + bf16 cast

    def check(x):
        out = jax.block_until_ready(fully_connected_nn(x, prepared))
        assert out.shape == (x.shape[0], D_OUT)
        # Exact-path check (bf16 operands, f32 accumulation, same math as kernel).
        ref_q = reference_forward_bf16(x, params)
        assert jnp.allclose(out, ref_q, atol=5e-3, rtol=5e-3), (
            float(jnp.max(jnp.abs(out - ref_q))))
        # Loose check against the pure-f32 reference (bf16 quantization noise only).
        ref = reference_forward(x, params)
        assert jnp.allclose(out, ref, atol=6e-2, rtol=6e-2), (
            float(jnp.max(jnp.abs(out - ref))))
        return out

    # Small "MNIST-like" batches of flattened 28x28 images.
    check(jax.random.normal(k_x1, (16, D_IN), jnp.float32))    # single full tile
    check(jax.random.normal(k_x2, (12, D_IN), jnp.float32))    # ragged, < one tile
    check(jax.random.normal(k_x3, (1000, D_IN), jnp.float32))  # multi-step grid,
                                                               # Buffered(3), ragged tail
    print("KERNEL_OK")
</pallas_src>

<mosaic_0001>
module attributes {stable_mosaic.version = 11 : i64} {
  func.func @mlp_kernel(%arg0: i32, %arg1: memref<16x784xf32, #tpu.memory_space<vmem>>, %arg2: memref<784x128xbf16, #tpu.memory_space<vmem>>, %arg3: memref<1x128xf32, #tpu.memory_space<vmem>>, %arg4: memref<128x128xbf16, #tpu.memory_space<vmem>>, %arg5: memref<1x128xf32, #tpu.memory_space<vmem>>, %arg6: memref<128x10xbf16, #tpu.memory_space<vmem>>, %arg7: memref<1x10xf32, #tpu.memory_space<vmem>>, %arg8: memref<16x10xf32, #tpu.memory_space<vmem>>) attributes {dimension_semantics = [#tpu.dimension_semantics<parallel>], iteration_bounds = array<i64: 1>, scalar_prefetch = 0 : i64, scratch_operands = 0 : i64, tpu.core_type = #tpu.core_type<tc>, window_params = [{transform_indices = @transform_0, window_bounds = array<i64: 16, 784>}, {pipeline_mode = #tpu.pipeline_mode<synchronous>, transform_indices = @transform_1, window_bounds = array<i64: 784, 128>}, {pipeline_mode = #tpu.pipeline_mode<synchronous>, transform_indices = @transform_2, window_bounds = array<i64: 1, 128>}, {pipeline_mode = #tpu.pipeline_mode<synchronous>, transform_indices = @transform_3, window_bounds = array<i64: 128, 128>}, {pipeline_mode = #tpu.pipeline_mode<synchronous>, transform_indices = @transform_4, window_bounds = array<i64: 1, 128>}, {pipeline_mode = #tpu.pipeline_mode<synchronous>, transform_indices = @transform_5, window_bounds = array<i64: 128, 10>}, {pipeline_mode = #tpu.pipeline_mode<synchronous>, transform_indices = @transform_6, window_bounds = array<i64: 1, 10>}, {transform_indices = @transform_7, window_bounds = array<i64: 16, 10>}]} {
    %c0 = arith.constant 0 : index
    %c0_0 = arith.constant 0 : index
    %0 = vector.load %arg1[%c0, %c0_0] : memref<16x784xf32, #tpu.memory_space<vmem>>, vector<16x784xf32>
    %1 = arith.truncf %0 : vector<16x784xf32> to vector<16x784xbf16>
    %c0_1 = arith.constant 0 : index
    %c0_2 = arith.constant 0 : index
    %2 = vector.load %arg2[%c0_1, %c0_2] : memref<784x128xbf16, #tpu.memory_space<vmem>>, vector<784x128xbf16>
    %cst = arith.constant dense<0.000000e+00> : vector<16x128xf32>
    %3 = tpu.matmul %1, %2, %cst {dimension_numbers = #tpu.dot_dimension_numbers<[1], [0], [0], [1], [0, 0, 1, 1], [], []>} : vector<16x784xbf16>, vector<784x128xbf16>, vector<16x128xf32> -> vector<16x128xf32>
    %c0_3 = arith.constant 0 : index
    %c0_4 = arith.constant 0 : index
    %4 = vector.load %arg3[%c0_3, %c0_4] : memref<1x128xf32, #tpu.memory_space<vmem>>, vector<1x128xf32>
    %5 = vector.broadcast %4 : vector<1x128xf32> to vector<16x128xf32>
    %6 = arith.addf %3, %5 : vector<16x128xf32>
    %cst_5 = arith.constant 0.000000e+00 : f32
    %7 = vector.broadcast %cst_5 : f32 to vector<16x128xf32>
    %8 = arith.maximumf %6, %7 : vector<16x128xf32>
    %9 = arith.truncf %8 : vector<16x128xf32> to vector<16x128xbf16>
    %c0_6 = arith.constant 0 : index
    %c0_7 = arith.constant 0 : index
    %10 = vector.load %arg4[%c0_6, %c0_7] : memref<128x128xbf16, #tpu.memory_space<vmem>>, vector<128x128xbf16>
    %cst_8 = arith.constant dense<0.000000e+00> : vector<16x128xf32>
    %11 = tpu.matmul %9, %10, %cst_8 {dimension_numbers = #tpu.dot_dimension_numbers<[1], [0], [0], [1], [0, 0, 1, 1], [], []>} : vector<16x128xbf16>, vector<128x128xbf16>, vector<16x128xf32> -> vector<16x128xf32>
    %c0_9 = arith.constant 0 : index
    %c0_10 = arith.constant 0 : index
    %12 = vector.load %arg5[%c0_9, %c0_10] : memref<1x128xf32, #tpu.memory_space<vmem>>, vector<1x128xf32>
    %13 = vector.broadcast %12 : vector<1x128xf32> to vector<16x128xf32>
    %14 = arith.addf %11, %13 : vector<16x128xf32>
    %cst_11 = arith.constant 0.000000e+00 : f32
    %15 = vector.broadcast %cst_11 : f32 to vector<16x128xf32>
    %16 = arith.maximumf %14, %15 : vector<16x128xf32>
    %17 = arith.truncf %16 : vector<16x128xf32> to vector<16x128xbf16>
    %c0_12 = arith.constant 0 : index
    %c0_13 = arith.constant 0 : index
    %18 = vector.load %arg6[%c0_12, %c0_13] : memref<128x10xbf16, #tpu.memory_space<vmem>>, vector<128x10xbf16>
    %cst_14 = arith.constant dense<0.000000e+00> : vector<16x10xf32>
    %19 = tpu.matmul %17, %18, %cst_14 {dimension_numbers = #tpu.dot_dimension_numbers<[1], [0], [0], [1], [0, 0, 1, 1], [], []>} : vector<16x128xbf16>, vector<128x10xbf16>, vector<16x10xf32> -> vector<16x10xf32>
    %c0_15 = arith.constant 0 : index
    %c0_16 = arith.constant 0 : index
    %20 = vector.load %arg7[%c0_15, %c0_16] : memref<1x10xf32, #tpu.memory_space<vmem>>, vector<1x10xf32>
    %21 = vector.broadcast %20 : vector<1x10xf32> to vector<16x10xf32>
    %22 = arith.addf %19, %21 : vector<16x10xf32>
    %c0_17 = arith.constant 0 : index
    %c0_18 = arith.constant 0 : index
    %23 = vector.load %arg8[%c0_17, %c0_18] : memref<16x10xf32, #tpu.memory_space<vmem>>, vector<16x10xf32>
    tpu.vector_store %arg8[%c0_17, %c0_18], %22 {strides = array<i32>} : memref<16x10xf32, #tpu.memory_space<vmem>>, vector<16x10xf32>,
    return
  }
  func.func @transform_0(%arg0: i32) -> (i32, i32) {
    %c0_i32 = arith.constant 0 : i32
    %c0_i32_0 = arith.constant 0 : i32
    return %arg0, %c0_i32 : i32, i32
  }
  func.func @transform_1(%arg0: i32) -> (i32, i32) {
    %c0_i32 = arith.constant 0 : i32
    %c0_i32_0 = arith.constant 0 : i32
    %c0_i32_1 = arith.constant 0 : i32
    return %c0_i32, %c0_i32_0 : i32, i32
  }
  func.func @transform_2(%arg0: i32) -> (i32, i32) {
    %c0_i32 = arith.constant 0 : i32
    %c0_i32_0 = arith.constant 0 : i32
    %c0_i32_1 = arith.constant 0 : i32
    return %c0_i32, %c0_i32_0 : i32, i32
  }
  func.func @transform_3(%arg0: i32) -> (i32, i32) {
    %c0_i32 = arith.constant 0 : i32
    %c0_i32_0 = arith.constant 0 : i32
    %c0_i32_1 = arith.constant 0 : i32
    return %c0_i32, %c0_i32_0 : i32, i32
  }
  func.func @transform_4(%arg0: i32) -> (i32, i32) {
    %c0_i32 = arith.constant 0 : i32
    %c0_i32_0 = arith.constant 0 : i32
    %c0_i32_1 = arith.constant 0 : i32
    return %c0_i32, %c0_i32_0 : i32, i32
  }
  func.func @transform_5(%arg0: i32) -> (i32, i32) {
    %c0_i32 = arith.constant 0 : i32
    %c0_i32_0 = arith.constant 0 : i32
    %c0_i32_1 = arith.constant 0 : i32
    return %c0_i32, %c0_i32_0 : i32, i32
  }
  func.func @transform_6(%arg0: i32) -> (i32, i32) {
    %c0_i32 = arith.constant 0 : i32
    %c0_i32_0 = arith.constant 0 : i32
    %c0_i32_1 = arith.constant 0 : i32
    return %c0_i32, %c0_i32_0 : i32, i32
  }
  func.func @transform_7(%arg0: i32) -> (i32, i32) {
    %c0_i32 = arith.constant 0 : i32
    %c0_i32_0 = arith.constant 0 : i32
    return %arg0, %c0_i32 : i32, i32
  }
}

</mosaic_0001>

<bundles_post_ra>
// kernel: tpu_custom_call.1
= control target key start
LH: loop header
LB: loop body
LE: loop exit
PB: predicated region body
PF: predicated region fallthrough
CT: control target
= control target key end

     0   :  { %12 = vsyncpa [#allocation3], 0  ;;  %s1411_s0 = inlined_call_operand.hbm [shape: f32[16,784], index: 0, kind: input, shape index: {}]   ;;  %s1412_s1 = inlined_call_operand.hbm [shape: bf16[784,128], index: 1, kind: input, shape index: {}]   ;;  %s1413_s2 = inlined_call_operand.vmem [shape: f32[1,128], index: 2, kind: input, shape index: {}]   ;;  %s1414_s3 = inlined_call_operand.vmem [shape: bf16[128,128], index: 3, kind: input, shape index: {}]   ;;  %s1415_s4 = inlined_call_operand.vmem [shape: f32[1,128], index: 4, kind: input, shape index: {}]   ;;  %s1416_s5 = inlined_call_operand.vmem [shape: bf16[128,10], index: 5, kind: input, shape index: {}]   ;;  %s1417_s6 = inlined_call_operand.vmem [shape: f32[1,10], index: 6, kind: input, shape index: {}]   ;;  %s1418_s7 = inlined_call_operand.hbm [shape: f32[16,10], index: 7, kind: output, shape index: {}]  }
   0x1   :  { %13 = vsyncpa [#allocation6], 0 }
   0x2   :  { %14 = vsyncpa [#allocation4], 0  ;;  %s1244_s24 = smov [#allocation2]   ;;  %s1172_s28 = scalar_lea.hbm %s1411_s0, 1792 }
   0x3   :  { %s20_s25 = sshll.u32 %s1244_s24, 4  ;;  %p1173_p0 = scmp.ne.s32.totalorder %s1411_s0, %s1172_s28  ;;  %s21_s25 = int_to_ptr.vmem [resolvable:$true] %s20_s25 }
   0x4   :  { %p1176_p1 = scmp.lt.u32.totalorder %s1172_s28, %s1411_s0 }
   0x6   :  { %p1178_p2 = pnand %p1176_p1, %p1173_p0 }
   0x8   :  { %1181 = shalt.err (!%p1178_p2)
}
   0x9   :  { %s1182_s10 = scalar_lea.vmem %s21_s25, 1792  ;;  %p1187_p4 = scmp.lt.s32.totalorder %s21_s25, %s21_s25 }
   0xa   :  { %p1183_p3 = scmp.ne.s32.totalorder %s21_s25, %s1182_s10  ;;  %p1188_p5 = scmp.lt.s32.totalorder %s1182_s10, %s1182_s10 }
   0xc   :  { %p1189_p6 = por %p1188_p5, %p1187_p4 }
   0xe   :  { %p1190_p7 = pnand %p1189_p6, %p1183_p3 }
  0x10   :  { %1193 = shalt.err (!%p1190_p7)
}
  0x11   :  { %s1245_s11 = smov 896   ;;  %s1246_s12 = smov 56  }
  0x12   :  { %26 = dma.hbm_to_vmem [thread:$0]  %s1411_s0, 1792, %s21_s25, [#allocation3], %s1245_s11, %s1245_s11, %s1246_s12  }
  0x13   :  { %s1247_s15 = smov [#allocation5]   ;;  %s1194_s19 = scalar_lea.hbm %s1412_s1, 6272 }
  0x14   :  { %s32_s16 = sshll.u32 %s1247_s15, 4  ;;  %p1195_p8 = scmp.ne.s32.totalorder %s1412_s1, %s1194_s19  ;;  %s33_s16 = int_to_ptr.vmem [resolvable:$true] %s32_s16 }
  0x15   :  { %p1198_p9 = scmp.lt.u32.totalorder %s1194_s19, %s1412_s1 }
  0x17   :  { %p1200_p10 = pnand %p1198_p9, %p1195_p8 }
  0x19   :  { %1203 = shalt.err (!%p1200_p10)
}
  0x1a   :  { %s1204_s24 = scalar_lea.vmem %s33_s16, 6272  ;;  %p1209_p12 = scmp.lt.s32.totalorder %s33_s16, %s33_s16 }
  0x1b   :  { %p1205_p11 = scmp.ne.s32.totalorder %s33_s16, %s1204_s24  ;;  %p1210_p13 = scmp.lt.s32.totalorder %s1204_s24, %s1204_s24 }
  0x1d   :  { %p1211_p0 = por %p1210_p13, %p1209_p12 }
  0x1f   :  { %p1212_p1 = pnand %p1211_p0, %p1205_p11 }
  0x21   :  { %1215 = shalt.err (!%p1212_p1)
}
  0x22   :  { %s1248_s0 = smov 64   ;;  %s1249_s25 = smov 4  }
  0x23   :  { %38 = dma.hbm_to_vmem [thread:$0]  %s1412_s1, 6272, %s33_s16, [#allocation6], %s1248_s0, %s1248_s0, %s1249_s25  }
  0x24   :  { %1238 = dma.done.wait [#allocation3], 1792  }
  0x25   :  { %1239 = vsyncadd [#allocation3], 4294965504 }
  0x26   :  { %1240 = dma.done.wait [#allocation6], 6272  }
  0x27   :  { %1241 = vsyncadd [#allocation6], 4294961024  ;;  %v1107_v0 = vld [vmem:[#allocation5 + $0x40] sm:$0xff]   ;;  %v1111_v4 = vld [vmem:[#allocation5 + $0x48] sm:$0xff]   ;;  %v1250_v43 = vmov 0.0   ;;  %vm1251_vm0 = vmmov 0  }
  0x28   :  { %v1108_v1 = vld [vmem:[#allocation5] sm:$0xff]   ;;  %964 = vmatprep.subr.bf16.mxu0 %v1107_v0  ;;  %v1112_v5 = vld [vmem:[#allocation5 + $0x8] sm:$0xff]   ;;  %v1115_v8 = vld [vmem:[#allocation5 + $0x50] sm:$0xff]   ;;  %vm476_vm1 = vcmask 130048   ;;  %vm874_vm2 = vcmask 80896  }
  0x29   :  { %v1109_v2 = vld [vmem:[#allocation5 + $0xc0] sm:$0xff]   ;;  %965 = vmatpush3.bf16.msra.mxu0 %v1108_v1  ;;  %v1113_v6 = vld [vmem:[#allocation5 + $0xc8] sm:$0xff]   ;;  %v1116_v9 = vld [vmem:[#allocation5 + $0x10] sm:$0xff]  }
  0x2a   :  { %v1110_v3 = vld [vmem:[#allocation5 + $0x80] sm:$0xff]   ;;  %986 = vmatprep.subr.bf16.mxu1 %v1109_v2  ;;  %966 = vmatprep.subr.bf16.mxu0 %v1111_v4  ;;  %v1114_v7 = vld [vmem:[#allocation5 + $0x88] sm:$0xff]   ;;  %v1117_v10 = vld [vmem:[#allocation5 + $0xd0] sm:$0xff]  }
  0x2b   :  { %987 = vmatpush3.bf16.msra.mxu1 %v1110_v3  ;;  %v1118_v11 = vld [vmem:[#allocation5 + $0x90] sm:$0xff]   ;;  %v1119_v12 = vld [vmem:[#allocation5 + $0x58] sm:$0xff]   ;;  %v1123_v16 = vld [vmem:[#allocation5 + $0x60] sm:$0xff]  }
  0x2c   :  { %988 = vmatprep.subr.bf16.mxu1 %v1113_v6  ;;  %v1120_v13 = vld [vmem:[#allocation5 + $0x18] sm:$0xff]   ;;  %v1124_v17 = vld [vmem:[#allocation5 + $0x20] sm:$0xff]   ;;  %v1127_v20 = vld [vmem:[#allocation5 + $0x68] sm:$0xff]  }
  0x2d   :  { %967 = vmatpush3.bf16.msra.mxu0 %v1112_v5  ;;  %v1121_v14 = vld [vmem:[#allocation5 + $0xd8] sm:$0xff]   ;;  %v1125_v18 = vld [vmem:[#allocation5 + $0xe0] sm:$0xff]   ;;  %v1128_v21 = vld [vmem:[#allocation5 + $0x28] sm:$0xff]  }
  0x2e   :  { %968 = vmatprep.subr.bf16.mxu0 %v1115_v8  ;;  %v1122_v15 = vld [vmem:[#allocation5 + $0x98] sm:$0xff]   ;;  %v1126_v19 = vld [vmem:[#allocation5 + $0xa0] sm:$0xff]   ;;  %v1129_v22 = vld [vmem:[#allocation5 + $0xe8] sm:$0xff]  }
  0x2f   :  { %989 = vmatpush3.bf16.msra.mxu1 %v1114_v7  ;;  %v1130_v23 = vld [vmem:[#allocation5 + $0xa8] sm:$0xff]   ;;  %v1131_v24 = vld [vmem:[#allocation5 + $0x70] sm:$0xff]   ;;  %v1135_v28 = vld [vmem:[#allocation5 + $0x78] sm:$0xff]  }
  0x30   :  { %990 = vmatprep.subr.bf16.mxu1 %v1117_v10  ;;  %v1132_v25 = vld [vmem:[#allocation5 + $0x30] sm:$0xff]   ;;  %v1136_v29 = vld [vmem:[#allocation5 + $0x38] sm:$0xff]   ;;  %v63_v36 = vld [vmem:[#allocation2 + $0x38] sm:$0xff] }
  0x31   :  { %969 = vmatpush3.bf16.msra.mxu0 %v1116_v9  ;;  %v1133_v26 = vld [vmem:[#allocation5 + $0xf0] sm:$0xff]   ;;  %v1137_v30 = vld [vmem:[#allocation5 + $0xf8] sm:$0xff]   ;;  %v1139_v38 = vld [vmem:[#allocation5 + $0x140] sm:$0xff]  }
  0x32   :  { %970 = vmatprep.subr.bf16.mxu0 %v1119_v12  ;;  %v1134_v27 = vld [vmem:[#allocation5 + $0xb0] sm:$0xff]   ;;  %v57_v31 = vld [vmem:[#allocation2 + $0x8] sm:$0xff]  ;;  %v59_v39 = vld [vmem:[#allocation2 + $0x18] sm:$0xff] }
  0x33   :  { %991 = vmatpush3.bf16.msra.mxu1 %v1118_v11  ;;  %v64_v32 = vld [vmem:[#allocation2 + $0x40] sm:$0xff]  ;;  %v1138_v34 = vld [vmem:[#allocation5 + $0xb8] sm:$0xff]   ;;  %v66_v40 = vld [vmem:[#allocation2 + $0x50] sm:$0xff] }
  0x34   :  { %992 = vmatprep.subr.bf16.mxu1 %v1121_v14  ;;  %v71_v33 = vpack.c.bf16 %v64_v32, %v57_v31  ;;  %v56_v35 = vld [vmem:[#allocation2] sm:$0xff]  ;;  %v73_v41 = vpack.c.bf16 %v66_v40, %v59_v39  ;;  %v1140_v42 = vld [vmem:[#allocation5 + $0x100] sm:$0xff]   ;;  %v65_v45 = vld [vmem:[#allocation2 + $0x48] sm:$0xff] }
  0x35   :  { %971 = vmatpush3.bf16.msra.mxu0 %v1120_v13  ;;  %v70_v37 = vpack.c.bf16 %v63_v36, %v56_v35  ;;  %v58_v44 = vld [vmem:[#allocation2 + $0x10] sm:$0xff]  ;;  %v1141_v47 = vld [vmem:[#allocation5 + $0x148] sm:$0xff]   ;;  %v1143_v49 = vld [vmem:[#allocation5 + $0x150] sm:$0xff]  }
  0x36   :  { %972 = vmatprep.subr.bf16.mxu0 %v1123_v16  ;;  %512 = vmatprep.mubr.bf16.mxu0 %v71_v33  ;;  %v72_v46 = vpack.c.bf16 %v65_v45, %v58_v44  ;;  %v1142_v48 = vld [vmem:[#allocation5 + $0x108] sm:$0xff]   ;;  %v1144_v50 = vld [vmem:[#allocation5 + $0x110] sm:$0xff]   ;;  %v1145_v51 = vld [vmem:[#allocation5 + $0x158] sm:$0xff]  }
  0x37   :  { %993 = vmatpush3.bf16.msra.mxu1 %v1122_v15  ;;  %553 = vmatprep.mubr.bf16.mxu1 %v73_v41  ;;  %v1146_v52 = vld [vmem:[#allocation5 + $0x118] sm:$0xff]   ;;  %v1147_v53 = vld [vmem:[#allocation5 + $0x160] sm:$0xff]   ;;  %v1149_v55 = vld [vmem:[#allocation5 + $0x168] sm:$0xff]  }
  0x38   :  { %994 = vmatprep.subr.bf16.mxu1 %v1125_v18  ;;  %v1148_v54 = vld [vmem:[#allocation5 + $0x120] sm:$0xff]   ;;  %v61_v57 = vld [vmem:[#allocation2 + $0x28] sm:$0xff]  ;;  %v1150_v58 = vld [vmem:[#allocation5 + $0x128] sm:$0xff]  }
  0x39   :  { %973 = vmatpush3.bf16.msra.mxu0 %v1124_v17  ;;  %v1155_v56 = vld [vmem:[#allocation5 + $0x180] sm:$0xff]   ;;  %v1151_v59 = vld [vmem:[#allocation5 + $0x170] sm:$0xff]   ;;  %v69_v63 = vld [vmem:[#allocation2 + $0x68] sm:$0xff] }
  0x3a   :  { %974 = vmatprep.subr.bf16.mxu0 %v1127_v20  ;;  %v68_v60 = vld [vmem:[#allocation2 + $0x60] sm:$0xff]  ;;  %v62_v62 = vld [vmem:[#allocation2 + $0x30] sm:$0xff]  ;;  %v1153_v2 = vld [vmem:[#allocation5 + $0x178] sm:$0xff]  }
  0x3b   :  { %995 = vmatpush3.bf16.msra.mxu1 %v1126_v19  ;;  %v75_v61 = vpack.c.bf16 %v68_v60, %v61_v57  ;;  %v76_v0 = vpack.c.bf16 %v69_v63, %v62_v62  ;;  %v1152_v1 = vld [vmem:[#allocation5 + $0x130] sm:$0xff]   ;;  %v1154_v3 = vld [vmem:[#allocation5 + $0x138] sm:$0xff]   ;;  %v67_v5 = vld [vmem:[#allocation2 + $0x58] sm:$0xff] }
  0x3c   :  { %996 = vmatprep.subr.bf16.mxu1 %v1129_v22  ;;  %v60_v4 = vld [vmem:[#allocation2 + $0x20] sm:$0xff]  ;;  %v1157_v8 = vld [vmem:[%s1414_s3 + $0x8] sm:$0xff]   ;;  %v1158_v9 = vld [vmem:[%s1414_s3 + $0x10] sm:$0xff]  }
  0x3d   :  { %975 = vmatpush3.bf16.msra.mxu0 %v1128_v21  ;;  %v74_v6 = vpack.c.bf16 %v67_v5, %v60_v4  ;;  %v1156_v7 = vld [vmem:[%s1414_s3] sm:$0xff]   ;;  %v1159_v10 = vld [vmem:[%s1414_s3 + $0x18] sm:$0xff]   ;;  %v1161_v12 = vld [vmem:[%s1414_s3 + $0x28] sm:$0xff]  }
  0x3e   :  { %976 = vmatprep.subr.bf16.mxu0 %v1131_v24  ;;  %v1160_v11 = vld [vmem:[%s1414_s3 + $0x20] sm:$0xff]   ;;  %v1162_v13 = vld [vmem:[%s1414_s3 + $0x30] sm:$0xff]   ;;  %v1163_v14 = vld [vmem:[%s1414_s3 + $0x38] sm:$0xff]  }
  0x3f   :  { %997 = vmatpush3.bf16.msra.mxu1 %v1130_v23  ;;  %v1164_v15 = vld [vmem:[%s1416_s5] sm:$0xff]   ;;  %v1165_v16 = vld [vmem:[%s1416_s5 + $0x8] sm:$0xff]   ;;  %v1166_v17 = vld [vmem:[%s1416_s5 + $0x10] sm:$0xff]  }
  0x40   :  { %998 = vmatprep.subr.bf16.mxu1 %v1133_v26  ;;  %v1167_v18 = vld [vmem:[%s1416_s5 + $0x18] sm:$0xff]   ;;  %v1168_v19 = vld [vmem:[%s1416_s5 + $0x20] sm:$0xff]   ;;  %v1169_v20 = vld [vmem:[%s1416_s5 + $0x28] sm:$0xff]  }
  0x41   :  { %977 = vmatpush3.bf16.msra.mxu0 %v1132_v25  ;;  %v895_v22 = vld [vmem:[%s1413_s2] ss:$0 sm:$0xff]  ;;  %v1171_v57 = vld [vmem:[%s1416_s5 + $0x38] sm:$0xff]  }
  0x42   :  { %978 = vmatprep.subr.bf16.mxu0 %v1135_v28 }
  0x43   :  { %999 = vmatpush3.bf16.msra.mxu1 %v1134_v27 }
  0x44   :  { %1000 = vmatprep.subr.bf16.mxu1 %v1137_v30 }
  0x45   :  { %979 = vmatpush3.bf16.msra.mxu0 %v1136_v29 }
  0x46   :  { %1008 = vmatprep.subr.bf16.mxu0 %v1139_v38 }
  0x47   :  { %1001 = vmatpush3.bf16.msra.mxu1 %v1138_v34 }
  0x48   :  { %1050 = vmatprep.subr.bf16.mxu1 %v1250_v43  ;;  %513 = vmatmul.mubr.bf16.vlgmr.msra.gmra.mrb[0].mxu0 %v70_v37 }
  0x49   :  { %1009 = vmatpush3.bf16.msra.mxu0 %v1140_v42  ;;  %594 = vmatprep.mubr.bf16.mxu0 %v75_v61 }
  0x4a   :  { %554 = vmatmul.mubr.bf16.vlgmr.msra.gmra.mrb[0].mxu1 %v72_v46  ;;  %1010 = vmatprep.subr.bf16.mxu0 %v1141_v47 }
  0x4b   :  { %1052 = vmatprep.mubr.msk.bf16.mxu1 %vm1251_vm0, %v1250_v43  ;;  %1051 = vmatpush3.bf16.msra.mxu1 %v1155_v56  ;;  %v1170_v56 = vld [vmem:[%s1416_s5 + $0x30] sm:$0xff]   ;;  %s1252_s5 = smov [#allocation7]  }
  0x4c   :  { %1056 = vmatprep.subr.bf16.mxu1 %v1250_v43  ;;  %s882_s15 = sshll.u32 %s1252_s5, 4  ;;  %s883_s15 = int_to_ptr.vmem [resolvable:$true] %s882_s15 }
  0x4d   :  { %1011 = vmatpush3.bf16.msra.mxu0 %v1142_v48  ;;  %p1221_p3 = scmp.lt.s32.totalorder %s883_s15, %s883_s15 }
  0x4e   :  { %1012 = vmatprep.subr.bf16.mxu0 %v1143_v49 }
  0x51   :  { %1013 = vmatpush3.bf16.msra.mxu0 %v1144_v50 }
  0x52   :  { %1014 = vmatprep.subr.bf16.mxu0 %v1145_v51  ;;  %1053 = vmatmul.mubr.msk.bf16.vlgmr.msra.gmra.mrb[4].mxu1 %vm476_vm1, %v76_v0 }
  0x53   :  { %1072 = vmatprep.mubr.msk.bf16.mxu1 %vm1251_vm0, %v1250_v43  ;;  %1057 = vmatpush3.bf16.msra.mxu1 %v1156_v7 }
  0x54   :  { %1058 = vmatprep.subr.bf16.mxu1 %v1250_v43 }
  0x55   :  { %1015 = vmatpush3.bf16.msra.mxu0 %v1146_v52 }
  0x56   :  { %1016 = vmatprep.subr.bf16.mxu0 %v1147_v53 }
  0x57   :  { %1059 = vmatpush3.bf16.msra.mxu1 %v1157_v8 }
  0x58   :  { %1060 = vmatprep.subr.bf16.mxu1 %v1250_v43 }
  0x59   :  { %1017 = vmatpush3.bf16.msra.mxu0 %v1148_v54 }
  0x5a   :  { %1018 = vmatprep.subr.bf16.mxu0 %v1149_v55 }
  0x5b   :  { %1061 = vmatpush3.bf16.msra.mxu1 %v1158_v9 }
  0x5c   :  { %1062 = vmatprep.subr.bf16.mxu1 %v1250_v43 }
  0x5d   :  { %1019 = vmatpush3.bf16.msra.mxu0 %v1150_v58  ;;  %v946_v58 = vld [vmem:[%s1415_s4] ss:$0 sm:$0xff]  ;;  %s1216_s4 = scalar_lea.vmem %s883_s15, 256 }
  0x5e   :  { %1020 = vmatprep.subr.bf16.mxu0 %v1151_v59  ;;  %p1217_p2 = scmp.ne.s32.totalorder %s883_s15, %s1216_s4  ;;  %p1222_p4 = scmp.lt.s32.totalorder %s1216_s4, %s1216_s4 }
  0x5f   :  { %1063 = vmatpush3.bf16.msra.mxu1 %v1159_v10 }
  0x60   :  { %1064 = vmatprep.subr.bf16.mxu1 %v1250_v43  ;;  %p1223_p5 = por %p1222_p4, %p1221_p3 }
  0x61   :  { %1021 = vmatpush3.bf16.msra.mxu0 %v1152_v1 }
  0x62   :  { %1022 = vmatprep.subr.bf16.mxu0 %v1153_v2  ;;  %p1224_p6 = pnand %p1223_p5, %p1217_p2 }
  0x63   :  { %1065 = vmatpush3.bf16.msra.mxu1 %v1160_v11 }
  0x64   :  { %1066 = vmatprep.subr.bf16.mxu1 %v1250_v43 }
  0x65   :  { %1023 = vmatpush3.bf16.msra.mxu0 %v1154_v3 }
  0x66   :  { %1076 = vmatprep.subr.bf16.mxu0 %v1250_v43 }
  0x67   :  { %1067 = vmatpush3.bf16.msra.mxu1 %v1161_v12 }
  0x68   :  { %595 = vmatmul.mubr.bf16.vlgmr.msra.gmra.mrb[4].mxu0 %v74_v6  ;;  %1068 = vmatprep.subr.bf16.mxu1 %v1250_v43 }
  0x69   :  { %1092 = vmatprep.mubr.msk.bf16.mxu0 %vm1251_vm0, %v1250_v43  ;;  %1077 = vmatpush3.bf16.msra.mxu0 %v1164_v15 }
  0x6a   :  { %1078 = vmatprep.subr.bf16.mxu0 %v1250_v43 }
  0x6b   :  { %1069 = vmatpush3.bf16.msra.mxu1 %v1162_v13 }
  0x6c   :  { %1070 = vmatprep.subr.bf16.mxu1 %v1250_v43 }
  0x6d   :  { %1079 = vmatpush3.bf16.msra.mxu0 %v1165_v16 }
  0x6e   :  { %1080 = vmatprep.subr.bf16.mxu0 %v1250_v43 }
  0x6f   :  { %1071 = vmatpush3.bf16.msra.mxu1 %v1163_v14 }
  0x71   :  { %1081 = vmatpush3.bf16.msra.mxu0 %v1166_v17 }
  0x72   :  { %1082 = vmatprep.subr.bf16.mxu0 %v1250_v43 }
  0x75   :  { %1083 = vmatpush3.bf16.msra.mxu0 %v1167_v18 }
  0x76   :  { %1084 = vmatprep.subr.bf16.mxu0 %v1250_v43 }
  0x79   :  { %1085 = vmatpush3.bf16.msra.mxu0 %v1168_v19 }
  0x7a   :  { %1086 = vmatprep.subr.bf16.mxu0 %v1250_v43 }
  0x7d   :  { %1087 = vmatpush3.bf16.msra.mxu0 %v1169_v20 }
  0x7e   :  { %1088 = vmatprep.subr.bf16.mxu0 %v1250_v43 }
  0x81   :  { %1089 = vmatpush3.bf16.msra.mxu0 %v1170_v56 }
  0x82   :  { %1090 = vmatprep.subr.bf16.mxu0 %v1250_v43  ;;  %v955_v43 = vld [vmem:[%s1417_s6] ss:$0 sm:$0xff] }
  0x85   :  { %1091 = vmatpush3.bf16.msra.mxu0 %v1171_v57 }
 0x11b   :  { %v980_v21 = vpop.f32.mrb[0].mxu0 }
 0x11c   :  { %v981_v23 = vpop.f32.mrb[1].mxu0 }
 0x11d   :  { %v982_v24 = vadd.f32 %v981_v23, %v980_v21  ;;  %v983_v25 = vpop.f32.mrb[2].mxu0  ;;  %v1002_v26 = vpop.f32.mrb[0].mxu1 }
 0x11e   :  { %v984_v27 = vpop.f32.mrb[3].mxu0  ;;  %v1003_v30 = vpop.f32.mrb[1].mxu1 }
 0x11f   :  { %v515_v28 = vadd.f32 %v982_v24, %v895_v22  ;;  %v985_v29 = vadd.f32 %v984_v27, %v983_v25  ;;  %v1004_v31 = vadd.f32 %v1003_v30, %v1002_v26  ;;  %v1005_v32 = vpop.f32.mrb[2].mxu1 }
 0x120   :  { %v1006_v34 = vpop.f32.mrb[3].mxu1 }
 0x121   :  { %v518_v33 = vadd.f32 %v985_v29, %v895_v22  ;;  %v556_v35 = vadd.f32 %v1004_v31, %v515_v28  ;;  %v1007_v36 = vadd.f32 %v1006_v34, %v1005_v32 }
 0x123   :  { %v559_v37 = vadd.f32 %v1007_v36, %v518_v33 }
 0x125   :  { %v637_v38 = vpop.f32.mrb[4].mxu1 }
 0x126   :  { %v1054_v39 = vpop.f32.mrb[5].mxu1 }
 0x127   :  { %v640_v40 = vpop.f32.mrb[6].mxu1 }
 0x128   :  { %v1055_v41 = vpop.f32.mrb[7].mxu1 }
 0x13b   :  { %v1024_v42 = vpop.f32.mrb[4].mxu0 }
 0x13c   :  { %v1025_v44 = vpop.f32.mrb[5].mxu0 }
 0x13d   :  { %v1026_v45 = vadd.f32 %v1025_v44, %v1024_v42  ;;  %v1027_v46 = vpop.f32.mrb[6].mxu0 }
 0x13e   :  { %v1028_v47 = vpop.f32.mrb[7].mxu0 }
 0x13f   :  { %v597_v48 = vadd.f32 %v1026_v45, %v556_v35  ;;  %v1029_v49 = vadd.f32 %v1028_v47, %v1027_v46 }
 0x141   :  { %v638_v50 = vadd.f32 %v637_v38, %v597_v48  ;;  %v600_v51 = vadd.f32 %v1029_v49, %v559_v37 }
 0x143   :  { %v641_v52 = vadd.f32 %v640_v40, %v600_v51  ;;  %v644_v53 = vmax.f32 %v638_v50, 0.0 }
 0x145   :  { %v645_v54 = vmax.f32 %v641_v52, 0.0 }
 0x147   :  { %v646_v55 = vpack.c.bf16 %v645_v54, %v644_v53 }
 0x149   :  { %1073 = vmatmul.mubr.bf16.vlgmr.msra.gmra.mrb[8].mxu1 %v646_v55 }
 0x21c   :  { %v752_v59 = vpop.f32.mrb[8].mxu1 }
 0x21d   :  { %v753_v60 = vadd.f32 %v946_v58, %v752_v59  ;;  %v1074_v61 = vpop.f32.mrb[9].mxu1 }
 0x21e   :  { %v755_v62 = vpop.f32.mrb[10].mxu1 }
 0x21f   :  { %v756_v63 = vadd.f32 %v946_v58, %v755_v62  ;;  %v1075_v0 = vpop.f32.mrb[11].mxu1  ;;  %v759_v1 = vmax.f32 %v753_v60, 0.0 }
 0x221   :  { %v760_v2 = vmax.f32 %v756_v63, 0.0 }
 0x223   :  { %v761_v3 = vpack.c.bf16 %v760_v2, %v759_v1 }
 0x225   :  { %1093 = vmatmul.mubr.bf16.vlgmr.msra.gmra.mrb[8].mxu0 %v761_v3 }
 0x2f8   :  { %v867_v4 = vpop.f32.mrb[8].mxu0 }
 0x2f9   :  { %v868_v5 = vadd.f32 %v955_v43, %v867_v4  ;;  %v1094_v6 = vpop.f32.mrb[9].mxu0 }
 0x2fa   :  { %v870_v7 = vpop.f32.mrb[10].mxu0 }
 0x2fb   :  { %875 = vst.msk [vmem:[#allocation7] sm:$0xff] %vm874_vm2, %v868_v5  ;;  %v871_v8 = vadd.f32 %v955_v43, %v870_v7  ;;  %v1095_v9 = vpop.f32.mrb[11].mxu0 }
 0x2fd   :  { %876 = vst.msk [vmem:[#allocation7 + $0x8] sm:$0xff] %vm874_vm2, %v871_v8 }
 0x2fe   :  { %1227 = shalt.err (!%p1224_p6)
}
 0x2ff   :  { %s1228_s17 = scalar_lea.hbm %s1418_s7, 256 }
 0x300   :  { %p1229_p7 = scmp.ne.s32.totalorder %s1418_s7, %s1228_s17  ;;  %p1232_p8 = scmp.lt.u32.totalorder %s1228_s17, %s1418_s7 }
 0x302   :  { %p1234_p9 = pnand %p1232_p8, %p1229_p7 }
 0x304   :  { %1237 = shalt.err (!%p1234_p9)
}
 0x305   :  { %s1253_s22 = smov 128   ;;  %s1254_s23 = smov 8  }
 0x306   :  { %888 = dma.vmem_to_hbm [thread:$0]  %s883_s15, 256, %s1418_s7, [#allocation4], %s1253_s22, %s1253_s22, %s1254_s23  }
 0x307   :  { %1242 = dma.done.wait [#allocation4], 256  }
 0x308   :  { %1243 = vsyncadd [#allocation4], 4294967040 }
 0x309   :  { %892 = vsyncpa [#allocation3], 1 }
 0x30a   :  { %893 = vsyncpa [#allocation6], 1 }
 0x30b   :  { %894 = vsyncpa [#allocation4], 1 }

</bundles_post_ra>
